<compile_context>
chip_gen: v7x
topology: tpu7x:2x2x1
jax: 0.10.0
libtpu: 0.0.40
codegen_flags: <defaults>
</compile_context>

<pallas_src>
import functools
import math

import jax
import jax.numpy as jnp
from jax import lax
from jax.experimental import pallas as pl
from jax.experimental.pallas import tpu as pltpu


def _round_up(x, m):
    return ((x + m - 1) // m) * m


# --------------------------------------------------------------------------- #
# Kernel 1: per-node MLP projection  M2[n, :] = W2[n]^T relu(W1[n]^T x[n] + b1[n]) + b2[n]
# --------------------------------------------------------------------------- #
def _mlp_kernel(x_ref, w1_ref, b1_ref, w2_ref, b2_ref, m2_ref):
    x = x_ref[...]                                   # (T, F)
    w1 = w1_ref[...]                                 # (T, F, H)
    w2 = w2_ref[...]                                 # (T, H, E)

    # Per-node Linear(F->H) + ReLU.
    # TODO(synk): per-node (batched) weights keep this off the MXU; it is O(N)
    # work vs the O(N^2) adjacency stage, so it is left as VPU broadcast+reduce.
    h = jnp.sum(x[:, :, None] * w1, axis=1) + b1_ref[...]   # (T, H)
    h = jnp.maximum(h, 0.0)

    # Per-node Linear(H->E).
    m2 = jnp.sum(h[:, :, None] * w2, axis=1) + b2_ref[...]  # (T, E)
    m2_ref[...] = m2


# --------------------------------------------------------------------------- #
# Kernel 2: tiled antisymmetric adjacency  A = relu(M1 M2^T - M2 M1^T)
# (second term is a second MXU matmul -- no in-kernel transpose)
# --------------------------------------------------------------------------- #
def _adjacency_kernel(m1_row_ref, m2_row_ref, m1_col_ref, m2_col_ref, a_ref,
                      *, matmul_dtype):
    m1_i = m1_row_ref[...].astype(matmul_dtype)      # (TM, E)
    m2_i = m2_row_ref[...].astype(matmul_dtype)      # (TM, E)
    m1_j = m1_col_ref[...].astype(matmul_dtype)      # (TN, E)
    m2_j = m2_col_ref[...].astype(matmul_dtype)      # (TN, E)

    dims = (((1,), (1,)), ((), ()))                  # contract on E (B transposed)
    s1 = lax.dot_general(m1_i, m2_j, dims, preferred_element_type=jnp.float32)
    s2 = lax.dot_general(m2_i, m1_j, dims, preferred_element_type=jnp.float32)
    a_ref[...] = jnp.maximum(s1 - s2, 0.0)


# --------------------------------------------------------------------------- #
# Forward wrapper (mirrors ProjectedEmbedding.forward)
# --------------------------------------------------------------------------- #
def projected_embedding_forward(x, w1, b1, w2, b2, prev_embed, topk,
                                *, matmul_dtype=jnp.float32):
    """Returns (edge_indices, edge_attr, A, M2, num_edges).

    edge_indices / edge_attr are padded to the static bound N*topk
    (padding = -1 / 0); num_edges gives the true count.
    """
    N, F = x.shape
    H = w1.shape[-1]
    E = w2.shape[-1]

    # ---- node tiling (pad N so tiles divide evenly; padded rows are zeros) ----
    if N <= 256:
        n_pad, tile_a, tile_mlp = N, N, N
    else:
        tile_a = 256                       # lane-dense (multiple of 128) A stores
        n_pad = _round_up(N, tile_a)
        tile_mlp = 128                     # keeps MLP intermediates well under scoped VMEM

    def pad_nodes(a):
        if n_pad == N:
            return a
        return jnp.pad(a, [(0, n_pad - N)] + [(0, 0)] * (a.ndim - 1))

    xp, w1p, b1p, w2p, b2p, m1p = map(pad_nodes, (x, w1, b1, w2, b2, prev_embed))

    # ---- stage 1: per-node MLP -> M2 ----
    m2p = pl.pallas_call(
        _mlp_kernel,
        out_shape=jax.ShapeDtypeStruct((n_pad, E), jnp.float32),
        grid_spec=pltpu.PrefetchScalarGridSpec(
            num_scalar_prefetch=0,
            grid=(n_pad // tile_mlp,),
            in_specs=[
                pl.BlockSpec((tile_mlp, F), lambda i: (i, 0)),
                pl.BlockSpec((tile_mlp, F, H), lambda i: (i, 0, 0)),
                pl.BlockSpec((tile_mlp, H), lambda i: (i, 0)),
                pl.BlockSpec((tile_mlp, H, E), lambda i: (i, 0, 0)),
                pl.BlockSpec((tile_mlp, E), lambda i: (i, 0)),
            ],
            out_specs=pl.BlockSpec((tile_mlp, E), lambda i: (i, 0)),
        ),
        compiler_params=pltpu.CompilerParams(dimension_semantics=("parallel",)),
    )(xp, w1p, b1p, w2p, b2p)

    # ---- stage 2: tiled A = relu(M1 M2^T - M2 M1^T) ----
    grid_a = (n_pad // tile_a, n_pad // tile_a)
    adj_kernel = functools.partial(_adjacency_kernel, matmul_dtype=matmul_dtype)
    cost = pl.CostEstimate(
        flops=int(2 * 2 * n_pad * n_pad * E),
        transcendentals=0,
        bytes_accessed=int(4 * (4 * n_pad * E * grid_a[0] + n_pad * n_pad)),
    )
    a_pad = pl.pallas_call(
        adj_kernel,
        out_shape=jax.ShapeDtypeStruct((n_pad, n_pad), jnp.float32),
        grid_spec=pltpu.PrefetchScalarGridSpec(
            num_scalar_prefetch=0,
            grid=grid_a,
            in_specs=[
                pl.BlockSpec((tile_a, E), lambda i, j: (i, 0)),   # M1 row tile
                pl.BlockSpec((tile_a, E), lambda i, j: (i, 0)),   # M2 row tile
                pl.BlockSpec((tile_a, E), lambda i, j: (j, 0)),   # M1 col tile
                pl.BlockSpec((tile_a, E), lambda i, j: (j, 0)),   # M2 col tile
            ],
            out_specs=pl.BlockSpec((tile_a, tile_a), lambda i, j: (i, j)),
        ),
        compiler_params=pltpu.CompilerParams(
            dimension_semantics=("parallel", "parallel")),
        cost_estimate=cost,
    )(m1p, m2p, m1p, m2p)

    A = a_pad[:N, :N]
    m2 = m2p[:N]

    # ---- glue: top-k row masking (torch: sort desc, zero everything past topk) ----
    # lax.top_k + keep-mask multiply instead of full argsort + big scatter.
    # TODO(synk): tie-breaking among equal values may pick a different (same-size)
    # subset than torch.sort(descending=True).
    _, topk_idx = jax.lax.top_k(A, topk)                      # (N, topk)
    col_ids = jnp.arange(N, dtype=topk_idx.dtype)
    keep = jnp.any(topk_idx[:, :, None] == col_ids[None, None, :], axis=1)  # (N, N)
    A_masked = jnp.where(keep, A, 0.0)

    # ---- glue: edge extraction (A > 0) ----
    # TODO(synk): boolean-mask indexing has data-dependent output size in PyTorch;
    # here it is emitted padded to the static bound N*topk.
    mask = A_masked > 0
    src_full = jnp.broadcast_to(jnp.arange(N)[:, None], (N, N))   # _edge_indices.T
    dst_full = jnp.broadcast_to(jnp.arange(N)[None, :], (N, N))   # _edge_indices
    max_edges = N * topk
    (flat_idx,) = jnp.nonzero(mask.ravel(), size=max_edges, fill_value=-1)
    valid = flat_idx >= 0
    safe = jnp.where(valid, flat_idx, 0)
    edge_src = jnp.where(valid, src_full.ravel()[safe], -1)
    edge_dst = jnp.where(valid, dst_full.ravel()[safe], -1)
    edge_attr = jnp.where(valid, A_masked.ravel()[safe], 0.0)
    edge_indices = jnp.stack([edge_src, edge_dst], axis=0)
    num_edges = jnp.sum(mask)

    return edge_indices, edge_attr, A_masked, m2, num_edges


if __name__ == "__main__":
    # Small shapes consistent with the module's forward:
    # num_nodes=8, num_node_features=4, hidden=64 (fixed in module), embed_dim=32, topk=3
    N, F, H, E, TOPK = 8, 4, 64, 32, 3

    key = jax.random.PRNGKey(0)
    kx, k1, k2, k3, k4, k5 = jax.random.split(key, 6)

    x = jax.random.normal(kx, (N, F), dtype=jnp.float32)

    # nn.Linear default init ~ U(-1/sqrt(fan_in), 1/sqrt(fan_in)) (deterministic synthetic init)
    lim1 = 1.0 / math.sqrt(F)
    lim2 = 1.0 / math.sqrt(H)
    w1 = jax.random.uniform(k1, (N, F, H), jnp.float32, -lim1, lim1)
    b1 = jax.random.uniform(k2, (N, H), jnp.float32, -lim1, lim1)
    w2 = jax.random.uniform(k3, (N, H, E), jnp.float32, -lim2, lim2)
    b2 = jax.random.uniform(k4, (N, E), jnp.float32, -lim2, lim2)

    # prev_embed: kaiming_uniform_(a=sqrt(5)) on an (N, E) tensor -> U(-1/sqrt(E), 1/sqrt(E))
    lim_pe = 1.0 / math.sqrt(E)
    prev_embed = jax.random.uniform(k5, (N, E), jnp.float32, -lim_pe, lim_pe)

    out = projected_embedding_forward(x, w1, b1, w2, b2, prev_embed, TOPK)
    jax.block_until_ready(out)

    edge_indices, edge_attr, A, m2, num_edges = out
    assert edge_indices.shape == (2, N * TOPK)
    assert edge_attr.shape == (N * TOPK,)
    assert A.shape == (N, N)
    assert m2.shape == (N, E)
    print("KERNEL_OK")
</pallas_src>

<mosaic_0001>
module attributes {stable_mosaic.version = 11 : i64} {
  func.func @_mlp_kernel(%arg0: i32, %arg1: memref<8x4xf32, #tpu.memory_space<vmem>>, %arg2: memref<8x4x64xf32, #tpu.memory_space<vmem>>, %arg3: memref<8x64xf32, #tpu.memory_space<vmem>>, %arg4: memref<8x64x32xf32, #tpu.memory_space<vmem>>, %arg5: memref<8x32xf32, #tpu.memory_space<vmem>>, %arg6: memref<8x32xf32, #tpu.memory_space<vmem>>) attributes {dimension_semantics = [#tpu.dimension_semantics<parallel>], iteration_bounds = array<i64: 1>, scalar_prefetch = 0 : i64, scratch_operands = 0 : i64, tpu.core_type = #tpu.core_type<tc>, window_params = [{transform_indices = @transform_0, window_bounds = array<i64: 8, 4>}, {transform_indices = @transform_1, window_bounds = array<i64: 8, 4, 64>}, {transform_indices = @transform_2, window_bounds = array<i64: 8, 64>}, {transform_indices = @transform_3, window_bounds = array<i64: 8, 64, 32>}, {transform_indices = @transform_4, window_bounds = array<i64: 8, 32>}, {transform_indices = @transform_5, window_bounds = array<i64: 8, 32>}]} {
    %c0 = arith.constant 0 : index
    %c0_0 = arith.constant 0 : index
    %0 = vector.load %arg1[%c0, %c0_0] : memref<8x4xf32, #tpu.memory_space<vmem>>, vector<8x4xf32>
    %c0_1 = arith.constant 0 : index
    %c0_2 = arith.constant 0 : index
    %c0_3 = arith.constant 0 : index
    %1 = vector.load %arg2[%c0_1, %c0_2, %c0_3] : memref<8x4x64xf32, #tpu.memory_space<vmem>>, vector<8x4x64xf32>
    %c0_4 = arith.constant 0 : index
    %c0_5 = arith.constant 0 : index
    %c0_6 = arith.constant 0 : index
    %2 = vector.load %arg4[%c0_4, %c0_5, %c0_6] : memref<8x64x32xf32, #tpu.memory_space<vmem>>, vector<8x64x32xf32>
    %3 = vector.shape_cast %0 : vector<8x4xf32> to vector<8x4x1xf32>
    %4 = vector.broadcast %3 : vector<8x4x1xf32> to vector<8x4x64xf32>
    %5 = arith.mulf %4, %1 : vector<8x4x64xf32>
    %cst = arith.constant dense<0.000000e+00> : vector<8x64xf32>
    %6 = vector.multi_reduction <add>, %5, %cst [1] : vector<8x4x64xf32> to vector<8x64xf32>
    %c0_7 = arith.constant 0 : index
    %c0_8 = arith.constant 0 : index
    %7 = vector.load %arg3[%c0_7, %c0_8] : memref<8x64xf32, #tpu.memory_space<vmem>>, vector<8x64xf32>
    %8 = arith.addf %6, %7 : vector<8x64xf32>
    %cst_9 = arith.constant 0.000000e+00 : f32
    %9 = vector.broadcast %cst_9 : f32 to vector<8x64xf32>
    %10 = arith.maximumf %8, %9 : vector<8x64xf32>
    %11 = vector.shape_cast %10 : vector<8x64xf32> to vector<8x64x1xf32>
    %12 = vector.broadcast %11 : vector<8x64x1xf32> to vector<8x64x32xf32>
    %13 = arith.mulf %12, %2 : vector<8x64x32xf32>
    %cst_10 = arith.constant dense<0.000000e+00> : vector<8x32xf32>
    %14 = vector.multi_reduction <add>, %13, %cst_10 [1] : vector<8x64x32xf32> to vector<8x32xf32>
    %c0_11 = arith.constant 0 : index
    %c0_12 = arith.constant 0 : index
    %15 = vector.load %arg5[%c0_11, %c0_12] : memref<8x32xf32, #tpu.memory_space<vmem>>, vector<8x32xf32>
    %16 = arith.addf %14, %15 : vector<8x32xf32>
    %c0_13 = arith.constant 0 : index
    %c0_14 = arith.constant 0 : index
    %17 = vector.load %arg6[%c0_13, %c0_14] : memref<8x32xf32, #tpu.memory_space<vmem>>, vector<8x32xf32>
    tpu.vector_store %arg6[%c0_13, %c0_14], %16 {strides = array<i32>} : memref<8x32xf32, #tpu.memory_space<vmem>>, vector<8x32xf32>,
    return
  }
  func.func @transform_0(%arg0: i32) -> (i32, i32) {
    %c0_i32 = arith.constant 0 : i32
    %c0_i32_0 = arith.constant 0 : i32
    return %arg0, %c0_i32 : i32, i32
  }
  func.func @transform_1(%arg0: i32) -> (i32, i32, i32) {
    %c0_i32 = arith.constant 0 : i32
    %c0_i32_0 = arith.constant 0 : i32
    %c0_i32_1 = arith.constant 0 : i32
    return %arg0, %c0_i32, %c0_i32_0 : i32, i32, i32
  }
  func.func @transform_2(%arg0: i32) -> (i32, i32) {
    %c0_i32 = arith.constant 0 : i32
    %c0_i32_0 = arith.constant 0 : i32
    return %arg0, %c0_i32 : i32, i32
  }
  func.func @transform_3(%arg0: i32) -> (i32, i32, i32) {
    %c0_i32 = arith.constant 0 : i32
    %c0_i32_0 = arith.constant 0 : i32
    %c0_i32_1 = arith.constant 0 : i32
    return %arg0, %c0_i32, %c0_i32_0 : i32, i32, i32
  }
  func.func @transform_4(%arg0: i32) -> (i32, i32) {
    %c0_i32 = arith.constant 0 : i32
    %c0_i32_0 = arith.constant 0 : i32
    return %arg0, %c0_i32 : i32, i32
  }
  func.func @transform_5(%arg0: i32) -> (i32, i32) {
    %c0_i32 = arith.constant 0 : i32
    %c0_i32_0 = arith.constant 0 : i32
    return %arg0, %c0_i32 : i32, i32
  }
}

</mosaic_0001>

<bundles_post_ra>
// kernel: tpu_custom_call.1
= control target key start
LH: loop header
LB: loop body
LE: loop exit
PB: predicated region body
PF: predicated region fallthrough
CT: control target
= control target key end

     0   :  { %v94_v0 = vlaneseq  ;;  %s1334_s0 = inlined_call_operand.vmem [shape: f32[8,4], index: 0, kind: input, shape index: {}]   ;;  %s1335_s1 = inlined_call_operand.vmem [shape: f32[8,4,64], index: 1, kind: input, shape index: {}]   ;;  %s1336_s2 = inlined_call_operand.vmem [shape: f32[8,64], index: 2, kind: input, shape index: {}]   ;;  %s1337_s3 = inlined_call_operand.vmem [shape: f32[8,64,32], index: 3, kind: input, shape index: {}]   ;;  %s1338_s4 = inlined_call_operand.vmem [shape: f32[8,32], index: 4, kind: input, shape index: {}]   ;;  %s1339_s5 = inlined_call_operand.hbm [shape: f32[8,32], index: 5, kind: output, shape index: {}]  }
   0x1   :  { %10 = vsyncpa [#allocation3], 0  ;;  %v21_v2 = vld [vmem:[%s1334_s0] sm:$0xff]  ;;  %vm158_vm0 = vcmask 519168   ;;  %v24_v30 = vld [vmem:[%s1335_s1 + $0x8] sm:$0xf] }
   0x2   :  { %v95_v1 = vshrl.u32 %v94_v0, 7  ;;  %v22_v19 = vld [vmem:[%s1335_s1] sm:$0xf]  ;;  %v23_v20 = vld [vmem:[%s1335_s1 + $0x4] sm:$0xf]  ;;  %vm592_vm1 = vcmask 261120  }
   0x3   :  { %v25_v36 = vld [vmem:[%s1335_s1 + $0xc] sm:$0xf]  ;;  %v910_v40 = vld [vmem:[%s1336_s2] sm:$0xff]  ;;  %v26_v49 = vld [vmem:[%s1335_s1 + $0x10] sm:$0xf]  ;;  %vm795_vm2 = vcmask 1041409  }
   0x4   :  { %v890_v3 = vsub.s32 0, %v95_v1  ;;  %v103_v4 = vsub.s32 1, %v95_v1  ;;  %v110_v5 = vsub.s32 2, %v95_v1  ;;  %v117_v6 = vsub.s32 3, %v95_v1  ;;  %v27_v55 = vld [vmem:[%s1335_s1 + $0x14] sm:$0xf] }
   0x5   :  { %v124_v11 = vsub.s32 4, %v95_v1  ;;  %v131_v12 = vsub.s32 5, %v95_v1  ;;  %v138_v15 = vsub.s32 6, %v95_v1  ;;  %v145_v16 = vsub.s32 7, %v95_v1 }
   0x6   :  { %v97_v7 = vrot.slane %v21_v2, %v890_v3  ;;  %v104_v8 = vrot.slane %v21_v2, %v103_v4  ;;  %v111_v9 = vrot.slane %v21_v2, %v110_v5  ;;  %v118_v10 = vrot.slane %v21_v2, %v117_v6  ;;  %v28_v6 = vld [vmem:[%s1335_s1 + $0x18] sm:$0xf] }
   0x7   :  { %v125_v13 = vrot.slane %v21_v2, %v124_v11  ;;  %v132_v14 = vrot.slane %v21_v2, %v131_v12  ;;  %v139_v17 = vrot.slane %v21_v2, %v138_v15  ;;  %v146_v18 = vrot.slane %v21_v2, %v145_v16 }
   0x8   :  { %99 = vbcast.lane.b32.xlu1 %v97_v7, 256  ;;  %106 = vbcast.lane.b32.xlu0 %v104_v8, 256  ;;  %v217_v59 = vrot.slane %v910_v40, 1  ;;  %vm798_vm3 = vcmask 1042434   ;;  %vm801_vm4 = vcmask 1043459   ;;  %vm804_vm5 = vcmask 1044484  }
   0x9   :  { %vm807_vm6 = vcmask 1045509   ;;  %vm810_vm7 = vcmask 1046534   ;;  %vm813_vm8 = vcmask 1047559  }
   0xc   :  { %113 = vbcast.lane.b32.xlu0 %v111_v9, 256  ;;  %120 = vbcast.lane.b32.xlu1 %v118_v10, 256 }
  0x10   :  { %127 = vbcast.lane.b32.xlu0 %v125_v13, 256  ;;  %134 = vbcast.lane.b32.xlu1 %v132_v14, 256  ;;  %v218_v14 = vrot.slane %v910_v40, 2 }
  0x14   :  { %141 = vbcast.lane.b32.xlu0 %v139_v17, 256  ;;  %148 = vbcast.lane.b32.xlu1 %v146_v18, 256 }
  0x7a   :  { %v100_v21 = vpop.permute.xlu1 %99  ;;  %v107_v22 = vpop.permute.xlu0 %106 }
  0x7b   :  { %v150_v23 = vmul.f32 %v100_v21, %v22_v19  ;;  %v151_v24 = vmul.f32 %v107_v22, %v23_v20  ;;  %v29_v20 = vld [vmem:[%s1335_s1 + $0x1c] sm:$0xf] }
  0x7d   :  { %v159_v25 = vsel %vm158_vm0, %v150_v23, 0.0  ;;  %v166_v26 = vsel %vm158_vm0, %v151_v24, 0.0  ;;  %v219_v23 = vrot.slane %v910_v40, 3 }
  0x7e   :  { %v160_v27 = vrot.slane %v159_v25, 4  ;;  %v167_v28 = vrot.slane %v166_v26, 4  ;;  %v114_v31 = vpop.permute.xlu0 %113  ;;  %v121_v37 = vpop.permute.xlu1 %120 }
  0x7f   :  { %v152_v34 = vmul.f32 %v114_v31, %v24_v30  ;;  %v153_v42 = vmul.f32 %v121_v37, %v25_v36  ;;  %v220_v36 = vrot.slane %v910_v40, 4 }
  0x80   :  { %v161_v29 = vadd.f32 %v160_v27, %v159_v25  ;;  %v168_v33 = vadd.f32 %v167_v28, %v166_v26 }
  0x81   :  { %v173_v41 = vsel %vm158_vm0, %v152_v34, 0.0  ;;  %v180_v47 = vsel %vm158_vm0, %v153_v42, 0.0 }
  0x82   :  { %v162_v32 = vrot.slane %v161_v29, 2  ;;  %v169_v39 = vrot.slane %v168_v33, 2  ;;  %v174_v46 = vrot.slane %v173_v41, 4  ;;  %v128_v50 = vpop.permute.xlu0 %127  ;;  %v181_v54 = vrot.slane %v180_v47, 4  ;;  %v135_v56 = vpop.permute.xlu1 %134 }
  0x83   :  { %v154_v57 = vmul.f32 %v128_v50, %v26_v49  ;;  %v155_v58 = vmul.f32 %v135_v56, %v27_v55 }
  0x84   :  { %v163_v35 = vadd.f32 %v162_v32, %v161_v29  ;;  %v170_v45 = vadd.f32 %v169_v39, %v168_v33  ;;  %v175_v53 = vadd.f32 %v174_v46, %v173_v41  ;;  %v182_v62 = vadd.f32 %v181_v54, %v180_v47 }
  0x85   :  { %v187_v63 = vsel %vm158_vm0, %v154_v57, 0.0  ;;  %v194_v0 = vsel %vm158_vm0, %v155_v58, 0.0  ;;  %v222_v54 = vrot.slane %v910_v40, 6 }
  0x86   :  { %v164_v38 = vrot.slane %v163_v35, 1  ;;  %v171_v52 = vrot.slane %v170_v45, 1  ;;  %v176_v61 = vrot.slane %v175_v53, 2  ;;  %v183_v4 = vrot.slane %v182_v62, 2  ;;  %v142_v7 = vpop.permute.xlu0 %141  ;;  %v149_v21 = vpop.permute.xlu1 %148 }
  0x87   :  { %v188_v5 = vrot.slane %v187_v63, 4  ;;  %v195_v8 = vrot.slane %v194_v0, 4  ;;  %v156_v13 = vmul.f32 %v142_v7, %v28_v6  ;;  %v157_v25 = vmul.f32 %v149_v21, %v29_v20  ;;  %v35_v20 = vld [vmem:[%s1337_s3 + $0x28] sm:$0xff] }
  0x88   :  { %v165_v43 = vadd.f32 %v164_v38, %v163_v35  ;;  %v172_v60 = vadd.f32 %v171_v52, %v170_v45  ;;  %v177_v2 = vadd.f32 %v176_v61, %v175_v53  ;;  %v184_v11 = vadd.f32 %v183_v4, %v182_v62 }
  0x89   :  { %v189_v12 = vadd.f32 %v188_v5, %v187_v63  ;;  %v196_v15 = vadd.f32 %v195_v8, %v194_v0  ;;  %v201_v22 = vsel %vm158_vm0, %v156_v13, 0.0  ;;  %v208_v31 = vsel %vm158_vm0, %v157_v25, 0.0 }
  0x8a   :  { %v232_v44 = vadd.f32 %v910_v40, %v165_v43  ;;  %v233_v1 = vadd.f32 %v217_v59, %v172_v60  ;;  %v178_v10 = vrot.slane %v177_v2, 1  ;;  %v185_v18 = vrot.slane %v184_v11, 1 }
  0x8b   :  { %v190_v19 = vrot.slane %v189_v12, 2  ;;  %v197_v24 = vrot.slane %v196_v15, 2  ;;  %v202_v29 = vrot.slane %v201_v22, 4  ;;  %v209_v38 = vrot.slane %v208_v31, 4 }
  0x8c   :  { %v240_v48 = vmax.f32 %v232_v44, 0.0  ;;  %v241_v9 = vmax.f32 %v233_v1, 0.0  ;;  %v179_v17 = vadd.f32 %v178_v10, %v177_v2  ;;  %v186_v27 = vadd.f32 %v185_v18, %v184_v11  ;;  %v32_v10 = vld [vmem:[%s1337_s3 + $0x10] sm:$0xff]  ;;  %v33_v11 = vld [vmem:[%s1337_s3 + $0x18] sm:$0xff] }
  0x8d   :  { %v191_v28 = vadd.f32 %v190_v19, %v189_v12  ;;  %v198_v30 = vadd.f32 %v197_v24, %v196_v15  ;;  %v203_v35 = vadd.f32 %v202_v29, %v201_v22  ;;  %v221_v44 = vrot.slane %v910_v40, 5  ;;  %v34_v19 = vld [vmem:[%s1337_s3 + $0x20] sm:$0xff]  ;;  %v36_v29 = vld [vmem:[%s1337_s3 + $0x30] sm:$0xff] }
  0x8e   :  { %v251_v51 = vrot.slane %v240_v48, %v890_v3  ;;  %v930_v16 = vrot.slane %v241_v9, %v890_v3  ;;  %v234_v26 = vadd.f32 %v218_v14, %v179_v17  ;;  %v235_v33 = vadd.f32 %v219_v23, %v186_v27 }
  0x8f   :  { %v192_v34 = vrot.slane %v191_v28, 1  ;;  %v199_v37 = vrot.slane %v198_v30, 1  ;;  %v204_v43 = vrot.slane %v203_v35, 2  ;;  %v210_v45 = vadd.f32 %v209_v38, %v208_v31 }
  0x90   :  { %257 = vbcast.lane.b32.xlu1 %v251_v51, 264  ;;  %253 = vbcast.lane.b32.xlu0 %v251_v51, 256  ;;  %v242_v32 = vmax.f32 %v234_v26, 0.0  ;;  %v243_v41 = vmax.f32 %v235_v33, 0.0  ;;  %v223_v63 = vrot.slane %v910_v40, 7  ;;  %v31_v40 = vld [vmem:[%s1337_s3 + $0x8] sm:$0xff] }
  0x91   :  { %v193_v42 = vadd.f32 %v192_v34, %v191_v28  ;;  %v200_v48 = vadd.f32 %v199_v37, %v198_v30  ;;  %v205_v49 = vadd.f32 %v204_v43, %v203_v35  ;;  %v211_v53 = vrot.slane %v210_v45, 2  ;;  %v37_v30 = vld [vmem:[%s1337_s3 + $0x38] sm:$0xff] }
  0x92   :  { %v946_v39 = vrot.slane %v242_v32, %v890_v3  ;;  %v356_v46 = vrot.slane %v243_v41, %v890_v3  ;;  %v39_v41 = vld [vmem:[%s1337_s3 + $0x48] sm:$0xff] }
  0x93   :  { %v236_v47 = vadd.f32 %v220_v36, %v193_v42  ;;  %v206_v52 = vrot.slane %v205_v49, 1  ;;  %v212_v58 = vadd.f32 %v211_v53, %v210_v45 }
  0x94   :  { %265 = vbcast.lane.b32.xlu1 %v251_v51, 280  ;;  %261 = vbcast.lane.b32.xlu0 %v251_v51, 272 }
  0x95   :  { %v244_v50 = vmax.f32 %v236_v47, 0.0  ;;  %v207_v57 = vadd.f32 %v206_v52, %v205_v49  ;;  %v213_v61 = vrot.slane %v212_v58, 1 }
  0x97   :  { %v391_v55 = vrot.slane %v244_v50, %v890_v3  ;;  %v238_v60 = vadd.f32 %v222_v54, %v207_v57  ;;  %v214_v0 = vadd.f32 %v213_v61, %v212_v58  ;;  %v40_v50 = vld [vmem:[%s1337_s3 + $0x50] sm:$0xff] }
  0x98   :  { %273 = vbcast.lane.b32.xlu1 %v251_v51, 296  ;;  %269 = vbcast.lane.b32.xlu0 %v251_v51, 288 }
  0x99   :  { %v246_v62 = vmax.f32 %v238_v60, 0.0  ;;  %v239_v2 = vadd.f32 %v223_v63, %v214_v0  ;;  %v43_v60 = vld [vmem:[%s1337_s3 + $0x68] sm:$0xff] }
  0x9b   :  { %v964_v1 = vrot.slane %v246_v62, %v890_v3  ;;  %v247_v4 = vmax.f32 %v239_v2, 0.0 }
  0x9c   :  { %281 = vbcast.lane.b32.xlu1 %v251_v51, 312  ;;  %277 = vbcast.lane.b32.xlu0 %v251_v51, 304  ;;  %v237_v51 = vadd.f32 %v221_v44, %v200_v48 }
  0x9d   :  { %v496_v5 = vrot.slane %v247_v4, %v890_v3 }
  0x9e   :  { %v245_v56 = vmax.f32 %v237_v51, 0.0  ;;  %v41_v51 = vld [vmem:[%s1337_s3 + $0x58] sm:$0xff] }
  0xa0   :  { %292 = vbcast.lane.b32.xlu1 %v930_v16, 264  ;;  %288 = vbcast.lane.b32.xlu0 %v930_v16, 256  ;;  %v957_v59 = vrot.slane %v245_v56, %v890_v3  ;;  %v30_v3 = vld [vmem:[%s1337_s3] sm:$0xff] }
  0xa4   :  { %300 = vbcast.lane.b32.xlu1 %v930_v16, 280  ;;  %296 = vbcast.lane.b32.xlu0 %v930_v16, 272 }
  0xa8   :  { %308 = vbcast.lane.b32.xlu1 %v930_v16, 296  ;;  %304 = vbcast.lane.b32.xlu0 %v930_v16, 288 }
  0xac   :  { %323 = vbcast.lane.b32.xlu1 %v946_v39, 256  ;;  %312 = vbcast.lane.b32.xlu0 %v930_v16, 304 }
  0xb0   :  { %327 = vbcast.lane.b32.xlu0 %v946_v39, 264  ;;  %358 = vbcast.lane.b32.xlu1 %v356_v46, 256 }
  0xb4   :  { %362 = vbcast.lane.b32.xlu0 %v356_v46, 264  ;;  %331 = vbcast.lane.b32.xlu1 %v946_v39, 272 }
  0xb8   :  { %393 = vbcast.lane.b32.xlu0 %v391_v55, 256  ;;  %397 = vbcast.lane.b32.xlu1 %v391_v55, 264 }
  0xbc   :  { %366 = vbcast.lane.b32.xlu0 %v356_v46, 272  ;;  %428 = vbcast.lane.b32.xlu1 %v957_v59, 256 }
  0xc0   :  { %432 = vbcast.lane.b32.xlu0 %v957_v59, 264  ;;  %335 = vbcast.lane.b32.xlu1 %v946_v39, 280 }
  0xc4   :  { %401 = vbcast.lane.b32.xlu0 %v391_v55, 272  ;;  %463 = vbcast.lane.b32.xlu1 %v964_v1, 256 }
  0xc8   :  { %467 = vbcast.lane.b32.xlu0 %v964_v1, 264  ;;  %370 = vbcast.lane.b32.xlu1 %v356_v46, 280 }
  0xcc   :  { %436 = vbcast.lane.b32.xlu0 %v957_v59, 272  ;;  %498 = vbcast.lane.b32.xlu1 %v496_v5, 256 }
  0xd0   :  { %502 = vbcast.lane.b32.xlu0 %v496_v5, 264  ;;  %339 = vbcast.lane.b32.xlu1 %v946_v39, 288 }
  0xd4   :  { %405 = vbcast.lane.b32.xlu0 %v391_v55, 280  ;;  %471 = vbcast.lane.b32.xlu1 %v964_v1, 272 }
  0xd8   :  { %374 = vbcast.lane.b32.xlu0 %v356_v46, 288  ;;  %440 = vbcast.lane.b32.xlu1 %v957_v59, 280 }
  0xdc   :  { %506 = vbcast.lane.b32.xlu0 %v496_v5, 272  ;;  %343 = vbcast.lane.b32.xlu1 %v946_v39, 296 }
  0xe0   :  { %409 = vbcast.lane.b32.xlu0 %v391_v55, 288  ;;  %475 = vbcast.lane.b32.xlu1 %v964_v1, 280 }
  0xe4   :  { %378 = vbcast.lane.b32.xlu0 %v356_v46, 296  ;;  %444 = vbcast.lane.b32.xlu1 %v957_v59, 288 }
  0xe8   :  { %510 = vbcast.lane.b32.xlu0 %v496_v5, 280  ;;  %347 = vbcast.lane.b32.xlu1 %v946_v39, 304 }
  0xec   :  { %413 = vbcast.lane.b32.xlu0 %v391_v55, 296  ;;  %479 = vbcast.lane.b32.xlu1 %v964_v1, 288 }
  0xf0   :  { %316 = vbcast.lane.b32.xlu0 %v930_v16, 312  ;;  %382 = vbcast.lane.b32.xlu1 %v356_v46, 304 }
  0xf4   :  { %448 = vbcast.lane.b32.xlu0 %v957_v59, 296  ;;  %514 = vbcast.lane.b32.xlu1 %v496_v5, 288 }
  0xf8   :  { %351 = vbcast.lane.b32.xlu0 %v946_v39, 312  ;;  %417 = vbcast.lane.b32.xlu1 %v391_v55, 304  ;;  %v38_v39 = vld [vmem:[%s1337_s3 + $0x40] sm:$0xff] }
  0xfc   :  { %483 = vbcast.lane.b32.xlu0 %v964_v1, 296  ;;  %386 = vbcast.lane.b32.xlu1 %v356_v46, 312 }
 0x100   :  { %452 = vbcast.lane.b32.xlu0 %v957_v59, 304  ;;  %518 = vbcast.lane.b32.xlu1 %v496_v5, 296 }
 0x102   :  { %v254_v6 = vpop.permute.xlu0 %253  ;;  %v258_v7 = vpop.permute.xlu1 %257 }
 0x103   :  { %v528_v8 = vmul.f32 %v254_v6, %v30_v3  ;;  %v529_v9 = vmul.f32 %v258_v7, %v31_v40  ;;  %v44_v3 = vld [vmem:[%s1337_s3 + $0x70] sm:$0xff] }
 0x104   :  { %421 = vbcast.lane.b32.xlu0 %v391_v55, 312  ;;  %487 = vbcast.lane.b32.xlu1 %v964_v1, 304 }
 0x105   :  { %v593_v12 = vsel %vm592_vm1, %v528_v8, 0.0  ;;  %v594_v13 = vsel %vm592_vm1, %v529_v9, 0.0  ;;  %v46_v8 = vld [vmem:[%s1337_s3 + $0x80] sm:$0xff] }
 0x106   :  { %v595_v14 = vadd.f32 %v594_v13, %v593_v12  ;;  %v262_v15 = vpop.permute.xlu0 %261  ;;  %v266_v16 = vpop.permute.xlu1 %265  ;;  %v47_v13 = vld [vmem:[%s1337_s3 + $0x88] sm:$0xff] }
 0x107   :  { %v530_v17 = vmul.f32 %v262_v15, %v32_v10  ;;  %v531_v18 = vmul.f32 %v266_v16, %v33_v11 }
 0x108   :  { %456 = vbcast.lane.b32.xlu0 %v957_v59, 312  ;;  %522 = vbcast.lane.b32.xlu1 %v496_v5, 304  ;;  %v42_v59 = vld [vmem:[%s1337_s3 + $0x60] sm:$0xff] }
 0x109   :  { %v596_v21 = vsel %vm592_vm1, %v530_v17, 0.0  ;;  %v598_v25 = vsel %vm592_vm1, %v531_v18, 0.0  ;;  %v54_v18 = vld [vmem:[%s1337_s3 + $0xc0] sm:$0xff] }
 0x10a   :  { %v597_v22 = vadd.f32 %v596_v21, %v595_v14  ;;  %v270_v23 = vpop.permute.xlu0 %269  ;;  %v274_v24 = vpop.permute.xlu1 %273  ;;  %v55_v21 = vld [vmem:[%s1337_s3 + $0xc8] sm:$0xff] }
 0x10b   :  { %v532_v26 = vmul.f32 %v270_v23, %v34_v19  ;;  %v533_v27 = vmul.f32 %v274_v24, %v35_v20 }
 0x10c   :  { %v599_v28 = vadd.f32 %v598_v25, %v597_v22  ;;  %491 = vbcast.lane.b32.xlu0 %v964_v1, 312  ;;  %526 = vbcast.lane.b32.xlu1 %v496_v5, 312  ;;  %v48_v22 = vld [vmem:[%s1337_s3 + $0x90] sm:$0xff] }
 0x10d   :  { %v600_v31 = vsel %vm592_vm1, %v532_v26, 0.0  ;;  %v602_v35 = vsel %vm592_vm1, %v533_v27, 0.0 }
 0x10e   :  { %v601_v32 = vadd.f32 %v600_v31, %v599_v28  ;;  %v278_v33 = vpop.permute.xlu0 %277  ;;  %v282_v34 = vpop.permute.xlu1 %281  ;;  %v62_v31 = vld [vmem:[%s1337_s3 + $0x100] sm:$0xff] }
 0x10f   :  { %v534_v36 = vmul.f32 %v278_v33, %v36_v29  ;;  %v535_v37 = vmul.f32 %v282_v34, %v37_v30 }
 0x110   :  { %v603_v38 = vadd.f32 %v602_v35, %v601_v32  ;;  %v63_v32 = vld [vmem:[%s1337_s3 + $0x108] sm:$0xff] }
 0x111   :  { %v604_v42 = vsel %vm592_vm1, %v534_v36, 0.0  ;;  %v606_v46 = vsel %vm592_vm1, %v535_v37, 0.0 }
 0x112   :  { %v605_v43 = vadd.f32 %v604_v42, %v603_v38  ;;  %v289_v44 = vpop.permute.xlu0 %288  ;;  %v293_v45 = vpop.permute.xlu1 %292 }
 0x113   :  { %v536_v47 = vmul.f32 %v289_v44, %v38_v39  ;;  %v537_v48 = vmul.f32 %v293_v45, %v39_v41 }
 0x114   :  { %v1024_v49 = vadd.f32 %v606_v46, %v605_v43  ;;  %v56_v43 = vld [vmem:[%s1337_s3 + $0xd0] sm:$0xff] }
 0x115   :  { %v614_v52 = vsel %vm592_vm1, %v536_v47, 0.0  ;;  %v615_v53 = vsel %vm592_vm1, %v537_v48, 0.0 }
 0x116   :  { %v616_v54 = vadd.f32 %v615_v53, %v614_v52  ;;  %v297_v55 = vpop.permute.xlu0 %296  ;;  %v301_v56 = vpop.permute.xlu1 %300 }
 0x117   :  { %v538_v57 = vmul.f32 %v297_v55, %v40_v50  ;;  %v539_v58 = vmul.f32 %v301_v56, %v41_v51 }
 0x119   :  { %v617_v61 = vsel %vm592_vm1, %v538_v57, 0.0  ;;  %v619_v1 = vsel %vm592_vm1, %v539_v58, 0.0 }
 0x11a   :  { %v618_v62 = vadd.f32 %v617_v61, %v616_v54  ;;  %v305_v63 = vpop.permute.xlu0 %304  ;;  %v309_v0 = vpop.permute.xlu1 %308 }
 0x11b   :  { %v540_v2 = vmul.f32 %v305_v63, %v42_v59  ;;  %v541_v4 = vmul.f32 %v309_v0, %v43_v60 }
 0x11c   :  { %v620_v5 = vadd.f32 %v619_v1, %v618_v62  ;;  %v608_v1 = vrot.slane %v1024_v49, 4 }
 0x11d   :  { %v621_v40 = vsel %vm592_vm1, %v540_v2, 0.0  ;;  %v623_v10 = vsel %vm592_vm1, %v541_v4, 0.0 }
 0x11e   :  { %v622_v6 = vadd.f32 %v621_v40, %v620_v5  ;;  %v313_v7 = vpop.permute.xlu0 %312  ;;  %v324_v9 = vpop.permute.xlu1 %323  ;;  %v609_v5 = vadd.f32 %v608_v1, %v1024_v49  ;;  %v71_v49 = vld [vmem:[%s1337_s3 + $0x148] sm:$0xff] }
 0x11f   :  { %v542_v11 = vmul.f32 %v313_v7, %v44_v3  ;;  %v544_v15 = vmul.f32 %v324_v9, %v46_v8 }
 0x120   :  { %v624_v12 = vadd.f32 %v623_v10, %v622_v6  ;;  %v610_v6 = vrot.slane %v609_v5, 2 }
 0x121   :  { %v625_v14 = vsel %vm592_vm1, %v542_v11, 0.0  ;;  %v635_v23 = vsel %vm592_vm1, %v544_v15, 0.0  ;;  %v79_v15 = vld [vmem:[%s1337_s3 + $0x188] sm:$0xff] }
 0x122   :  { %v1054_v16 = vadd.f32 %v625_v14, %v624_v12  ;;  %v328_v17 = vpop.permute.xlu0 %327  ;;  %v359_v19 = vpop.permute.xlu1 %358  ;;  %v611_v9 = vadd.f32 %v610_v6, %v609_v5  ;;  %v70_v12 = vld [vmem:[%s1337_s3 + $0x140] sm:$0xff]  ;;  %v64_v14 = vld [vmem:[%s1337_s3 + $0x110] sm:$0xff] }
 0x123   :  { %v545_v20 = vmul.f32 %v328_v17, %v47_v13  ;;  %v552_v25 = vmul.f32 %v359_v19, %v54_v18  ;;  %v49_v13 = vld [vmem:[%s1337_s3 + $0x98] sm:$0xff] }
 0x124   :  { %v612_v17 = vrot.slane %v611_v9, 1  ;;  %v57_v18 = vld [vmem:[%s1337_s3 + $0xd8] sm:$0xff] }
 0x125   :  { %v636_v24 = vsel %vm592_vm1, %v545_v20, 0.0  ;;  %v656_v33 = vsel %vm592_vm1, %v552_v25, 0.0 }
 0x126   :  { %v637_v26 = vadd.f32 %v636_v24, %v635_v23  ;;  %v363_v27 = vpop.permute.xlu0 %362  ;;  %v332_v28 = vpop.permute.xlu1 %331 }
 0x127   :  { %v553_v29 = vmul.f32 %v363_v27, %v55_v21  ;;  %v546_v30 = vmul.f32 %v332_v28, %v48_v22  ;;  %v78_v21 = vld [vmem:[%s1337_s3 + $0x180] sm:$0xff] }
 0x128   :  { %v1134_v27 = vld [vmem:[%s1338_s4] sm:$0xff] }
 0x129   :  { %v657_v34 = vsel %vm592_vm1, %v553_v29, 0.0  ;;  %v638_v35 = vsel %vm592_vm1, %v546_v30, 0.0  ;;  %v72_v29 = vld [vmem:[%s1337_s3 + $0x150] sm:$0xff]  ;;  %v613_v30 = vadd.f32 %v612_v17, %v611_v9 }
 0x12a   :  { %v658_v36 = vadd.f32 %v657_v34, %v656_v33  ;;  %v1076_v37 = vadd.f32 %v638_v35, %v637_v26  ;;  %v394_v38 = vpop.permute.xlu0 %393  ;;  %v398_v39 = vpop.permute.xlu1 %397  ;;  %v50_v33 = vld [vmem:[%s1337_s3 + $0xa0] sm:$0xff]  ;;  %v65_v34 = vld [vmem:[%s1337_s3 + $0x118] sm:$0xff]  ;;  %v763_v35 = vrot.slane %v1134_v27, 1 }
 0x12b   :  { %v560_v41 = vmul.f32 %v394_v38, %v62_v31  ;;  %v561_v42 = vmul.f32 %v398_v39, %v63_v32  ;;  %v87_v32 = vld [vmem:[%s1337_s3 + $0x1c8] sm:$0xff]  ;;  %v80_v39 = vld [vmem:[%s1337_s3 + $0x190] sm:$0xff]  ;;  %v1174_v1 = vadd.f32 %v1134_v27, %v613_v30 }
 0x12d   :  { %v677_v44 = vsel %vm592_vm1, %v560_v41, 0.0  ;;  %v678_v45 = vsel %vm592_vm1, %v561_v42, 0.0 }
 0x12e   :  { %v1083_v46 = vadd.f32 %v678_v45, %v677_v44  ;;  %v367_v47 = vpop.permute.xlu0 %366  ;;  %v429_v48 = vpop.permute.xlu1 %428  ;;  %v765_v44 = vrot.slane %v1134_v27, 3 }
 0x12f   :  { %v554_v50 = vmul.f32 %v367_v47, %v56_v43  ;;  %v568_v19 = vmul.f32 %v429_v48, %v70_v12  ;;  %v764_v43 = vrot.slane %v1134_v27, 2 }
 0x131   :  { %v659_v51 = vsel %vm592_vm1, %v554_v50, 0.0 }
 0x132   :  { %v1086_v52 = vadd.f32 %v659_v51, %v658_v36  ;;  %v433_v53 = vpop.permute.xlu0 %432  ;;  %v336_v54 = vpop.permute.xlu1 %335  ;;  %v698_v36 = vsel %vm592_vm1, %v568_v19, 0.0  ;;  %v86_v51 = vld [vmem:[%s1337_s3 + $0x1c0] sm:$0xff] }
 0x133   :  { %v569_v20 = vmul.f32 %v433_v53, %v71_v49  ;;  %v547_v24 = vmul.f32 %v336_v54, %v49_v13  ;;  %v73_v49 = vld [vmem:[%s1337_s3 + $0x158] sm:$0xff]  ;;  %v52_v13 = vld [vmem:[%s1337_s3 + $0xb0] sm:$0xff] }
 0x135   :  { %v699_v38 = vsel %vm592_vm1, %v569_v20, 0.0  ;;  %v640_v45 = vsel %vm592_vm1, %v547_v24, 0.0 }
 0x136   :  { %v402_v55 = vpop.permute.xlu0 %401  ;;  %v464_v56 = vpop.permute.xlu1 %463 }
 0x137   :  { %v562_v25 = vmul.f32 %v402_v55, %v64_v14  ;;  %v576_v31 = vmul.f32 %v464_v56, %v78_v21 }
 0x139   :  { %v680_v47 = vsel %vm592_vm1, %v562_v25, 0.0  ;;  %v719_v5 = vsel %vm592_vm1, %v576_v31, 0.0 }
 0x13a   :  { %v468_v57 = vpop.permute.xlu0 %467  ;;  %v371_v58 = vpop.permute.xlu1 %370 }
 0x13b   :  { %v577_v26 = vmul.f32 %v468_v57, %v79_v15  ;;  %v555_v28 = vmul.f32 %v371_v58, %v57_v18  ;;  %v51_v57 = vld [vmem:[%s1337_s3 + $0xa8] sm:$0xff]  ;;  %v45_v58 = vld [vmem:[%s1337_s3 + $0x78] sm:$0xff] }
 0x13d   :  { %v720_v48 = vsel %vm592_vm1, %v577_v26, 0.0  ;;  %v661_v53 = vsel %vm592_vm1, %v555_v28, 0.0 }
 0x13e   :  { %v437_v59 = vpop.permute.xlu0 %436  ;;  %v1088_v60 = vpop.permute.xlu1 %498  ;;  %v721_v9 = vadd.f32 %v720_v48, %v719_v5  ;;  %v662_v15 = vadd.f32 %v661_v53, %v1086_v52  ;;  %v59_v52 = vld [vmem:[%s1337_s3 + $0xe8] sm:$0xff]  ;;  %v89_v48 = vld [vmem:[%s1337_s3 + $0x1d8] sm:$0xff] }
 0x13f   :  { %v570_v50 = vmul.f32 %v437_v59, %v72_v29  ;;  %v700_v59 = vadd.f32 %v699_v38, %v698_v36  ;;  %v584_v12 = vmul.f32 %v1088_v60, %v86_v51  ;;  %v53_v51 = vld [vmem:[%s1337_s3 + $0xb8] sm:$0xff] }
 0x141   :  { %v701_v17 = vsel %vm592_vm1, %v570_v50, 0.0  ;;  %v740_v29 = vsel %vm592_vm1, %v584_v12, 0.0 }
 0x142   :  { %v503_v61 = vpop.permute.xlu0 %502  ;;  %v340_v62 = vpop.permute.xlu1 %339  ;;  %v702_v28 = vadd.f32 %v701_v17, %v700_v59 }
 0x143   :  { %v585_v54 = vmul.f32 %v503_v61, %v87_v32  ;;  %v548_v55 = vmul.f32 %v340_v62, %v50_v33  ;;  %v58_v61 = vld [vmem:[%s1337_s3 + $0xe0] sm:$0xff]  ;;  %v641_v62 = vadd.f32 %v640_v45, %v1076_v37  ;;  %v88_v37 = vld [vmem:[%s1337_s3 + $0x1d0] sm:$0xff] }
 0x144   :  { %v60_v32 = vld [vmem:[%s1337_s3 + $0xf0] sm:$0xff] }
 0x145   :  { %v741_v18 = vsel %vm592_vm1, %v585_v54, 0.0  ;;  %v642_v19 = vsel %vm592_vm1, %v548_v55, 0.0 }
 0x146   :  { %v406_v63 = vpop.permute.xlu0 %405  ;;  %v472_v0 = vpop.permute.xlu1 %471 }
 0x147   :  { %v563_v56 = vmul.f32 %v406_v63, %v65_v34  ;;  %v578_v6 = vmul.f32 %v472_v0, %v80_v39  ;;  %v681_v63 = vadd.f32 %v680_v47, %v1083_v46  ;;  %v643_v34 = vadd.f32 %v642_v19, %v641_v62  ;;  %v74_v47 = vld [vmem:[%s1337_s3 + $0x160] sm:$0xff]  ;;  %v75_v19 = vld [vmem:[%s1337_s3 + $0x168] sm:$0xff] }
 0x149   :  { %v682_v20 = vsel %vm592_vm1, %v563_v56, 0.0  ;;  %v722_v24 = vsel %vm592_vm1, %v578_v6, 0.0 }
 0x14a   :  { %v1091_v2 = vpop.permute.xlu0 %374  ;;  %v1093_v4 = vpop.permute.xlu1 %440  ;;  %v683_v39 = vadd.f32 %v682_v20, %v681_v63  ;;  %v723_v45 = vadd.f32 %v722_v24, %v721_v9 }
 0x14b   :  { %v556_v21 = vmul.f32 %v1091_v2, %v58_v61  ;;  %v571_v25 = vmul.f32 %v1093_v4, %v73_v49  ;;  %v66_v2 = vld [vmem:[%s1337_s3 + $0x120] sm:$0xff] }
 0x14d   :  { %v703_v53 = vsel %vm592_vm1, %v571_v25, 0.0 }
 0x14e   :  { %v1096_v3 = vpop.permute.xlu0 %506  ;;  %v1098_v40 = vpop.permute.xlu1 %343  ;;  %v704_v49 = vadd.f32 %v703_v53, %v702_v28 }
 0x14f   :  { %v549_v46 = vmul.f32 %v1098_v40, %v51_v57  ;;  %v586_v30 = vmul.f32 %v1096_v3, %v88_v37  ;;  %v81_v3 = vld [vmem:[%s1337_s3 + $0x198] sm:$0xff]  ;;  %v68_v37 = vld [vmem:[%s1337_s3 + $0x130] sm:$0xff] }
 0x151   :  { %v644_v36 = vsel %vm592_vm1, %v549_v46, 0.0  ;;  %v743_v56 = vsel %vm592_vm1, %v586_v30, 0.0 }
 0x152   :  { %v1100_v7 = vpop.permute.xlu0 %409  ;;  %v1102_v8 = vpop.permute.xlu1 %475  ;;  %v645_v57 = vadd.f32 %v644_v36, %v643_v34 }
 0x156   :  { %v1104_v10 = vpop.permute.xlu0 %378  ;;  %v1106_v11 = vpop.permute.xlu1 %444 }
 0x157   :  { %v557_v38 = vmul.f32 %v1104_v10, %v59_v52  ;;  %v564_v10 = vmul.f32 %v1100_v7, %v66_v2  ;;  %v572_v62 = vmul.f32 %v1106_v11, %v74_v47  ;;  %v67_v7 = vld [vmem:[%s1337_s3 + $0x128] sm:$0xff]  ;;  %v76_v2 = vld [vmem:[%s1337_s3 + $0x170] sm:$0xff] }
 0x159   :  { %v665_v61 = vsel %vm592_vm1, %v557_v38, 0.0  ;;  %v684_v17 = vsel %vm592_vm1, %v564_v10, 0.0  ;;  %v705_v25 = vsel %vm592_vm1, %v572_v62, 0.0  ;;  %v90_v38 = vld [vmem:[%s1337_s3 + $0x1e0] sm:$0xff] }
 0x15a   :  { %v1129_v22 = vpop.permute.xlu0 %510  ;;  %v348_v23 = vpop.permute.xlu1 %347  ;;  %v706_v53 = vadd.f32 %v705_v25, %v704_v49 }
 0x15b   :  { %v550_v26 = vmul.f32 %v348_v23, %v52_v13  ;;  %v742_v23 = vadd.f32 %v741_v18, %v740_v29  ;;  %v587_v63 = vmul.f32 %v1129_v22, %v89_v48 }
 0x15d   :  { %v646_v54 = vsel %vm592_vm1, %v550_v26, 0.0  ;;  %v745_v26 = vsel %vm592_vm1, %v587_v63, 0.0 }
 0x15e   :  { %v1154_v41 = vpop.permute.xlu0 %413  ;;  %v1156_v42 = vpop.permute.xlu1 %479  ;;  %v647_v13 = vadd.f32 %v646_v54, %v645_v57  ;;  %v91_v57 = vld [vmem:[%s1337_s3 + $0x1e8] sm:$0xff] }
 0x15f   :  { %v565_v46 = vmul.f32 %v1154_v41, %v67_v7 }
 0x161   :  { %v686_v36 = vsel %vm592_vm1, %v565_v46, 0.0 }
 0x162   :  { %v317_v0 = vpop.permute.xlu0 %316  ;;  %v383_v14 = vpop.permute.xlu1 %382 }
 0x163   :  { %v543_v60 = vmul.f32 %v317_v0, %v45_v58  ;;  %v558_v55 = vmul.f32 %v383_v14, %v60_v32  ;;  %v579_v58 = vmul.f32 %v1102_v8, %v81_v3  ;;  %v61_v8 = vld [vmem:[%s1337_s3 + $0xf8] sm:$0xff]  ;;  %v744_v14 = vadd.f32 %v743_v56, %v742_v23 }
 0x165   :  { %v627_v40 = vsel %vm592_vm1, %v543_v60, 0.0  ;;  %v667_v11 = vsel %vm592_vm1, %v558_v55, 0.0  ;;  %v82_v60 = vld [vmem:[%s1337_s3 + $0x1a0] sm:$0xff]  ;;  %v724_v24 = vsel %vm592_vm1, %v579_v58, 0.0  ;;  %v746_v10 = vadd.f32 %v745_v26, %v744_v14 }
 0x166   :  { %v628_v31 = vadd.f32 %v627_v40, %v1054_v16  ;;  %v449_v33 = vpop.permute.xlu0 %448  ;;  %v1214_v4 = vpop.permute.xlu1 %514  ;;  %v663_v16 = vsel %vm592_vm1, %v556_v21, 0.0  ;;  %v580_v32 = vmul.f32 %v1156_v42, %v82_v60  ;;  %v83_v42 = vld [vmem:[%s1337_s3 + $0x1a8] sm:$0xff] }
 0x167   :  { %v664_v12 = vadd.f32 %v663_v16, %v662_v15  ;;  %v573_v23 = vmul.f32 %v449_v33, %v75_v19 }
 0x168   :  { %v629_v50 = vrot.slane %v628_v31, 4 }
 0x169   :  { %v666_v15 = vadd.f32 %v665_v61, %v664_v12 }
 0x16a   :  { %v630_v59 = vadd.f32 %v629_v50, %v628_v31  ;;  %v352_v5 = vpop.permute.xlu0 %351  ;;  %v418_v6 = vpop.permute.xlu1 %417  ;;  %v685_v31 = vadd.f32 %v684_v17, %v683_v39 }
 0x16b   :  { %v551_v9 = vmul.f32 %v352_v5, %v53_v51  ;;  %v668_v28 = vadd.f32 %v667_v11, %v666_v15  ;;  %v566_v30 = vmul.f32 %v418_v6, %v68_v37  ;;  %v725_v51 = vadd.f32 %v724_v24, %v723_v45  ;;  %v69_v45 = vld [vmem:[%s1337_s3 + $0x138] sm:$0xff] }
 0x16c   :  { %v631_v0 = vrot.slane %v630_v59, 2  ;;  %v687_v58 = vadd.f32 %v686_v36, %v685_v31  ;;  %v707_v5 = vsel %vm592_vm1, %v573_v23, 0.0  ;;  %v588_v6 = vmul.f32 %v1214_v4, %v90_v38  ;;  %v77_v4 = vld [vmem:[%s1337_s3 + $0x178] sm:$0xff] }
 0x16d   :  { %v648_v22 = vsel %vm592_vm1, %v551_v9, 0.0  ;;  %v688_v55 = vsel %vm592_vm1, %v566_v30, 0.0  ;;  %v708_v46 = vadd.f32 %v707_v5, %v706_v53  ;;  %v85_v31 = vld [vmem:[%s1337_s3 + $0x1b8] sm:$0xff] }
 0x16e   :  { %v632_v18 = vadd.f32 %v631_v0, %v630_v59  ;;  %v649_v20 = vadd.f32 %v648_v22, %v647_v13  ;;  %v484_v21 = vpop.permute.xlu0 %483  ;;  %v387_v52 = vpop.permute.xlu1 %386  ;;  %v726_v59 = vsel %vm592_vm1, %v580_v32, 0.0  ;;  %v689_v49 = vadd.f32 %v688_v55, %v687_v58  ;;  %v92_v22 = vld [vmem:[%s1337_s3 + $0x1f0] sm:$0xff]  ;;  %v93_v32 = vld [vmem:[%s1337_s3 + $0x1f8] sm:$0xff] }
 0x16f   :  { %v559_v40 = vmul.f32 %v387_v52, %v61_v8  ;;  %v581_v63 = vmul.f32 %v484_v21, %v83_v42  ;;  %v727_v15 = vadd.f32 %v726_v59, %v725_v51  ;;  %v747_v60 = vsel %vm592_vm1, %v588_v6, 0.0 }
 0x170   :  { %v633_v41 = vrot.slane %v632_v18, 1  ;;  %v650_v29 = vrot.slane %v649_v20, 4  ;;  %v748_v23 = vadd.f32 %v747_v60, %v746_v10 }
 0x171   :  { %v669_v34 = vsel %vm592_vm1, %v559_v40, 0.0 }
 0x172   :  { %v634_v3 = vadd.f32 %v633_v41, %v632_v18  ;;  %v651_v16 = vadd.f32 %v650_v29, %v649_v20  ;;  %v670_v47 = vadd.f32 %v669_v34, %v668_v28  ;;  %v453_v48 = vpop.permute.xlu0 %452  ;;  %v519_v50 = vpop.permute.xlu1 %518  ;;  %v728_v20 = vsel %vm592_vm1, %v581_v63, 0.0 }
 0x173   :  { %v574_v33 = vmul.f32 %v453_v48, %v76_v2  ;;  %v589_v0 = vmul.f32 %v519_v50, %v91_v57  ;;  %v729_v34 = vadd.f32 %v728_v20, %v727_v15 }
 0x174   :  { %v779_v39 = vadd.f32 %v763_v35, %v634_v3  ;;  %v652_v54 = vrot.slane %v651_v16, 2  ;;  %v671_v56 = vrot.slane %v670_v47, 4  ;;  %v84_v35 = vld [vmem:[%s1337_s3 + $0x1b0] sm:$0xff]  ;;  %s856_s3 = smov [#allocation2]  }
 0x175   :  { %v709_v13 = vsel %vm592_vm1, %v574_v33, 0.0  ;;  %v749_v40 = vsel %vm592_vm1, %v589_v0, 0.0  ;;  %s823_s24 = sshll.u32 %s856_s3, 4  ;;  %s824_s24 = int_to_ptr.vmem [resolvable:$true] %s823_s24 }
 0x176   :  { %v794_v61 = vrot.slane %v779_v39, 7  ;;  %v653_v62 = vadd.f32 %v652_v54, %v651_v16  ;;  %v672_v7 = vadd.f32 %v671_v56, %v670_v47  ;;  %v422_v9 = vpop.permute.xlu0 %421  ;;  %v488_v12 = vpop.permute.xlu1 %487  ;;  %v710_v26 = vadd.f32 %v709_v13, %v708_v46  ;;  %s832_s25 = scalar_lea.vmem %s824_s24, 128  ;;  %p837_p1 = scmp.lt.s32.totalorder %s824_s24, %s824_s24 }
 0x177   :  { %v567_v8 = vmul.f32 %v422_v9, %v69_v45  ;;  %v582_v11 = vmul.f32 %v488_v12, %v84_v35  ;;  %v750_v51 = vadd.f32 %v749_v40, %v748_v23  ;;  %v766_v35 = vrot.slane %v1134_v27, 4  ;;  %p833_p0 = scmp.ne.s32.totalorder %s824_s24, %s832_s25  ;;  %p838_p2 = scmp.lt.s32.totalorder %s832_s25, %s832_s25 }
 0x178   :  { %v654_v14 = vrot.slane %v653_v62, 1  ;;  %v673_v17 = vrot.slane %v672_v7, 2  ;;  %v796_v37 = vsel %vm795_vm2, %v794_v61, %v1174_v1 }
 0x179   :  { %v690_v18 = vsel %vm592_vm1, %v567_v8, 0.0  ;;  %v730_v2 = vsel %vm592_vm1, %v582_v11, 0.0  ;;  %p839_p3 = por %p838_p2, %p837_p1 }
 0x17a   :  { %v655_v19 = vadd.f32 %v654_v14, %v653_v62  ;;  %v674_v21 = vadd.f32 %v673_v17, %v672_v7  ;;  %v691_v52 = vadd.f32 %v690_v18, %v689_v49  ;;  %v457_v24 = vpop.permute.xlu0 %456  ;;  %v523_v25 = vpop.permute.xlu1 %522  ;;  %v731_v53 = vadd.f32 %v730_v2, %v729_v34 }
 0x17b   :  { %v575_v41 = vmul.f32 %v457_v24, %v77_v4  ;;  %v590_v28 = vmul.f32 %v523_v25, %v92_v22  ;;  %v767_v14 = vrot.slane %v1134_v27, 5  ;;  %p840_p4 = pnand %p839_p3, %p833_p0 }
 0x17c   :  { %v780_v1 = vadd.f32 %v764_v43, %v655_v19  ;;  %v675_v29 = vrot.slane %v674_v21, 1  ;;  %v692_v30 = vrot.slane %v691_v52, 4  ;;  %v768_v19 = vrot.slane %v1134_v27, 6 }
 0x17d   :  { %v711_v36 = vsel %vm592_vm1, %v575_v41, 0.0  ;;  %v751_v3 = vsel %vm592_vm1, %v590_v28, 0.0 }
 0x17e   :  { %v797_v38 = vrot.slane %v780_v1, 6  ;;  %v676_v43 = vadd.f32 %v675_v29, %v674_v21  ;;  %v693_v16 = vadd.f32 %v692_v30, %v691_v52  ;;  %v712_v47 = vadd.f32 %v711_v36, %v710_v26  ;;  %v492_v48 = vpop.permute.xlu0 %491  ;;  %v527_v50 = vpop.permute.xlu1 %526 }
 0x17f   :  { %v583_v42 = vmul.f32 %v492_v48, %v85_v31  ;;  %v591_v33 = vmul.f32 %v527_v50, %v93_v32  ;;  %v752_v56 = vadd.f32 %v751_v3, %v750_v51  ;;  %v769_v52 = vrot.slane %v1134_v27, 7 }
 0x180   :  { %v781_v39 = vadd.f32 %v765_v44, %v676_v43  ;;  %v694_v54 = vrot.slane %v693_v16, 2  ;;  %v713_v10 = vrot.slane %v712_v47, 4  ;;  %v799_v55 = vsel %vm798_vm3, %v797_v38, %v796_v37 }
 0x181   :  { %v732_v57 = vsel %vm592_vm1, %v583_v42, 0.0  ;;  %v753_v45 = vsel %vm592_vm1, %v591_v33, 0.0 }
 0x182   :  { %v800_v58 = vrot.slane %v781_v39, 5  ;;  %v695_v59 = vadd.f32 %v694_v54, %v693_v16  ;;  %v714_v5 = vadd.f32 %v713_v10, %v712_v47  ;;  %v733_v6 = vadd.f32 %v732_v57, %v731_v53 }
 0x183   :  { %v754_v61 = vadd.f32 %v753_v45, %v752_v56 }
 0x184   :  { %v696_v62 = vrot.slane %v695_v59, 1  ;;  %v715_v63 = vrot.slane %v714_v5, 2  ;;  %v734_v44 = vrot.slane %v733_v6, 4  ;;  %v802_v7 = vsel %vm801_vm4, %v800_v58, %v799_v55 }
 0x185   :  { %v755_v9 = vrot.slane %v754_v61, 4 }
 0x186   :  { %v697_v12 = vadd.f32 %v696_v62, %v695_v59  ;;  %v716_v49 = vadd.f32 %v715_v63, %v714_v5  ;;  %v735_v13 = vadd.f32 %v734_v44, %v733_v6 }
 0x187   :  { %v756_v0 = vadd.f32 %v755_v9, %v754_v61 }
 0x188   :  { %v782_v8 = vadd.f32 %v766_v35, %v697_v12  ;;  %v717_v17 = vrot.slane %v716_v49, 1  ;;  %v736_v11 = vrot.slane %v735_v13, 2 }
 0x189   :  { %v757_v4 = vrot.slane %v756_v0, 2 }
 0x18a   :  { %v803_v22 = vrot.slane %v782_v8, 4  ;;  %v718_v37 = vadd.f32 %v717_v17, %v716_v49  ;;  %v737_v15 = vadd.f32 %v736_v11, %v735_v13 }
 0x18b   :  { %v758_v46 = vadd.f32 %v757_v4, %v756_v0 }
 0x18c   :  { %v783_v60 = vadd.f32 %v767_v14, %v718_v37  ;;  %v738_v18 = vrot.slane %v737_v15, 1  ;;  %v805_v20 = vsel %vm804_vm5, %v803_v22, %v802_v7 }
 0x18d   :  { %v759_v21 = vrot.slane %v758_v46, 1 }
 0x18e   :  { %v739_v24 = vadd.f32 %v738_v18, %v737_v15  ;;  %v806_v25 = vrot.slane %v783_v60, 3 }
 0x18f   :  { %v760_v26 = vadd.f32 %v759_v21, %v758_v46 }
 0x190   :  { %v784_v40 = vadd.f32 %v768_v19, %v739_v24  ;;  %v808_v41 = vsel %vm807_vm6, %v806_v25, %v805_v20 }
 0x191   :  { %v785_v28 = vadd.f32 %v769_v52, %v760_v26 }
 0x192   :  { %v809_v1 = vrot.slane %v784_v40, 2 }
 0x193   :  { %v812_v29 = vrot.slane %v785_v28, 1 }
 0x194   :  { %v811_v30 = vsel %vm810_vm7, %v809_v1, %v808_v41 }
 0x195   :  { %v814_v2 = vsel %vm813_vm8, %v812_v29, %v811_v30 }
 0x196   :  { %816 = vst.msk [vmem:[#allocation2] sm:$0xff] %vm592_vm1, %v814_v2 }
 0x197   :  { %843 = shalt.err (!%p840_p4)
}
 0x198   :  { %s844_s28 = scalar_lea.hbm %s1339_s5, 128 }
 0x199   :  { %p845_p5 = scmp.ne.s32.totalorder %s1339_s5, %s844_s28  ;;  %p848_p6 = scmp.lt.u32.totalorder %s844_s28, %s1339_s5 }
 0x19b   :  { %p850_p7 = pnand %p848_p6, %p845_p5 }
 0x19d   :  { %853 = shalt.err (!%p850_p7)
}
 0x19e   :  { %826 = dma.vmem_to_hbm [thread:$0]  %s824_s24, 128, %s1339_s5, [#allocation3]  }
 0x19f   :  { %854 = dma.done.wait [#allocation3], 128  }
 0x1a0   :  { %855 = vsyncadd [#allocation3], 4294967168 }
 0x1a1   :  { %830 = vsyncpa [#allocation3], 1 }

</bundles_post_ra>
